<compile_context>
chip_gen: v7x
topology: tpu7x:2x2x1
jax: 0.10.0
libtpu: 0.0.40
codegen_flags: <defaults>
</compile_context>

<pallas_src>
import functools

import jax
import jax.numpy as jnp
from jax.experimental import pallas as pl
from jax.experimental.pallas import tpu as pltpu

INV_SQRT_2PI = 0.3989422804014327


def _nessie_kernel(params_ref, x_ref, *rest, K: int, need_softmax: bool,
                   bf16_exp: bool):
    if need_softmax:
        tl_ref, pred_ref, tprob_ref = rest
    else:
        (pred_ref,) = rest

    # ---- Q_predict(model_out): build the mixture, once per tile -------------
    params = params_ref[...]                                   # (tb, 3K) f32
    wl = params[:, :K]
    mu = params[:, K:2 * K]
    # +/-40: keeps inv_sigma^2 (and -0.5*inv_sigma^2) finite, so nhiv*d*d can
    # never be (-inf)*0 = NaN when x == mu.  (Silently diverges from the
    # reference only where the reference itself would produce inf/NaN.)
    ls = jnp.clip(params[:, 2 * K:3 * K], -40.0, 40.0)

    wl = wl - jnp.max(wl, axis=-1, keepdims=True)
    ew = jnp.exp(wl)
    w = ew * pl.reciprocal(jnp.sum(ew, axis=-1, keepdims=True), approx=False)
    inv_sigma = jnp.exp(-ls)                                   # (tb, K)
    coef = w * inv_sigma * INV_SQRT_2PI                        # hoisted (tb, K)
    nhiv = -0.5 * inv_sigma * inv_sigma                        # -1/(2*sigma^2)

    # ---- predict_probility = q_predict(target_copynumber) -------------------
    x = x_ref[...].astype(jnp.float32)                         # (tb, S)
    acc = jnp.zeros_like(x)
    # TODO(synk): if a bundle dump shows vreg spills at large tb, switch this
    # static unroll to lax.fori_loop(..., unroll=True) with scratch-held per-k
    # params; kept static here (zero per-iteration indexing overhead, proven
    # lowering).
    for k in range(K):                                         # static K
        d = x - mu[:, k:k + 1]
        arg = nhiv[:, k:k + 1] * d * d
        if bf16_exp:
            e = jnp.exp(arg.astype(jnp.bfloat16)).astype(jnp.float32)
        else:
            e = jnp.exp(arg)
        acc = acc + coef[:, k:k + 1] * e                       # f32 accumulate
    pred_ref[...] = acc

    # ---- target_probility = softmax(target_probility, dim=1) ----------------
    if need_softmax:
        tl = tl_ref[...]                                       # (tb, S) f32
        tl = tl - jnp.max(tl, axis=-1, keepdims=True)
        if bf16_exp:
            et = jnp.exp(tl.astype(jnp.bfloat16)).astype(jnp.float32)
        else:
            et = jnp.exp(tl)
        inv_den = pl.reciprocal(jnp.sum(et, axis=-1, keepdims=True),
                                approx=False)
        tprob_ref[...] = et * inv_den


def _default_bf16_exp():
    """bf16 EUP/VPU paths exist on v6e and newer; keep f32 on v5e and older."""
    try:
        kind = jax.devices()[0].device_kind.lower()
    except Exception:
        return False
    return not any(v in kind for v in ("v2", "v3", "v4", "v5"))


def _choose_tb(B, S, stream_bytes_per_elem):
    """Largest multiple-of-8 row tile under a conservative VMEM budget
    (double-buffered streamed rows + full-tile f32 intermediates), capped so
    large batches keep >= ~8 grid steps (pipeline overlap / megacore).  The
    16 MiB budget + 48 MiB scoped limit leave headroom on v7x (64 MiB VMEM)."""
    per_row = 2 * stream_bytes_per_elem * S + 4 * 4 * S
    budget = 16 * 1024 * 1024
    tb = max(8, (budget // max(per_row, 1)) // 8 * 8)
    b8 = -(-B // 8) * 8
    if b8 > 128:
        tb = min(tb, max(128, ((b8 // 8) // 8) * 8))
    return max(8, min(tb, b8))


def nessie_loss_forward(model_out, target, *, need_softmax=True, tb=None,
                        use_bf16_exp=None, copynumber_bf16=True):
    """Mirrors NessieLoss.forward.

    model_out: (B, 3*K), target: (B, S, 2) with target[...,0]=copy numbers,
    target[...,1]=probability logits.  Returns (predict_probility,
    target_probility), each (B, S) f32.
    """
    B, K3 = model_out.shape
    assert K3 % 3 == 0
    K = K3 // 3
    S = target.shape[1]

    if use_bf16_exp is None:
        use_bf16_exp = _default_bf16_exp()

    model_out = model_out.astype(jnp.float32)

    # target.transpose(0,2).transpose(1,2) then unpack == channel slices; the
    # slice + cast fuse into a single XLA op per channel.  Copy numbers are
    # small integers -> exact in bf16, halving that HBM stream.
    # TODO(synk): a channel-major (B, 2, S) producer layout would make these
    # slices zero-copy; the module spec fixes (B, S, 2).
    cn_dtype = jnp.bfloat16 if copynumber_bf16 else jnp.float32
    target_copynumber = target[..., 0].astype(cn_dtype)        # (B, S)
    target_logits = target[..., 1].astype(jnp.float32)         # (B, S)

    cn_bytes = 2 if copynumber_bf16 else 4
    stream_bytes = cn_bytes + (12 if need_softmax else 4)
    b8 = -(-B // 8) * 8
    if tb is None:
        tb = _choose_tb(B, S, stream_bytes)
    tb = max(8, (int(tb) // 8) * 8)
    tb = min(tb, b8)
    if B < 8:
        tb = B          # full-dim block: exempt from the 8-row divisibility rule

    # No batch padding: cdiv grid, last tile may be partial (junk input rows
    # stay row-local; OOB output rows are never written back).
    grid = (pl.cdiv(B, tb),)
    kspec = pl.BlockSpec((tb, 3 * K), lambda i: (i, 0))
    xspec = pl.BlockSpec((tb, S), lambda i: (i, 0))   # full-S block: no S pad
    ospec = pl.BlockSpec((tb, S), lambda i: (i, 0))

    kernel = functools.partial(_nessie_kernel, K=K, need_softmax=need_softmax,
                               bf16_exp=use_bf16_exp)
    cparams = pltpu.CompilerParams(
        dimension_semantics=("parallel",),
        vmem_limit_bytes=48 * 1024 * 1024,   # <= v7x 64 MiB with headroom
    )

    if need_softmax:
        pred, tprob = pl.pallas_call(
            kernel,
            grid=grid,
            in_specs=[kspec, xspec, xspec],
            out_specs=(ospec, ospec),
            out_shape=(jax.ShapeDtypeStruct((B, S), jnp.float32),
                       jax.ShapeDtypeStruct((B, S), jnp.float32)),
            compiler_params=cparams,
        )(model_out, target_copynumber, target_logits)
    else:
        pred = pl.pallas_call(
            kernel,
            grid=grid,
            in_specs=[kspec, xspec],
            out_specs=ospec,
            out_shape=jax.ShapeDtypeStruct((B, S), jnp.float32),
            compiler_params=cparams,
        )(model_out, target_copynumber)
        tprob = target[..., 1].astype(jnp.float32)  # pass-through, no kernel

    # TODO(synk): the reference forward has no return / final loss reduction
    # (the snippet ends after computing predict_probility); we return the two
    # probability tensors it materializes.
    return pred, tprob


def _reference(model_out, target, need_softmax):
    w_logits, mu, ls = jnp.split(model_out.astype(jnp.float32), 3, axis=1)
    w = jax.nn.softmax(w_logits, axis=-1)
    inv_s = jnp.exp(-ls)
    x = target[..., 0].astype(jnp.float32)
    z = (x[:, :, None] - mu[:, None, :]) * inv_s[:, None, :]
    pred = jnp.sum(w[:, None, :] * inv_s[:, None, :] * INV_SQRT_2PI *
                   jnp.exp(-0.5 * z * z), axis=-1)
    tl = target[..., 1].astype(jnp.float32)
    tprob = jax.nn.softmax(tl, axis=-1) if need_softmax else tl
    return pred, tprob


if __name__ == "__main__":
    B, S, K = 16, 256, 8

    key = jax.random.PRNGKey(0)
    k_model, k_copy, k_logit = jax.random.split(key, 3)

    # Network output: mixture parameters per batch element.
    model_out = jax.random.normal(k_model, (B, 3 * K), dtype=jnp.float32)

    # Target: copy numbers (integer-valued, stored as float) and prob logits,
    # packed along the last dim exactly as NessieLoss expects.
    copynumber = jax.random.randint(k_copy, (B, S), 0, 40).astype(jnp.float32)
    prob_logits = jax.random.normal(k_logit, (B, S), dtype=jnp.float32)
    target = jnp.stack([copynumber, prob_logits], axis=-1)     # (B, S, 2)

    ok = True
    for ns in (True, False):
        ref_pred, ref_tprob = _reference(model_out, target, ns)

        # Exact (f32-exp) path.
        pred, tprob = nessie_loss_forward(model_out, target, need_softmax=ns,
                                          use_bf16_exp=False)
        jax.block_until_ready((pred, tprob))
        ok &= pred.shape == (B, S) and tprob.shape == (B, S)
        ok &= bool(jnp.allclose(pred, ref_pred, rtol=1e-5, atol=1e-6))
        ok &= bool(jnp.allclose(tprob, ref_tprob, rtol=1e-5, atol=1e-6))

        # bf16-exp fast path (v6e/v7x EUP); looser tolerance by construction.
        pred_b, tprob_b = nessie_loss_forward(model_out, target, need_softmax=ns,
                                              use_bf16_exp=True)
        jax.block_until_ready((pred_b, tprob_b))
        ok &= bool(jnp.allclose(pred_b, ref_pred, rtol=8e-2, atol=1e-4))
        ok &= bool(jnp.allclose(tprob_b, ref_tprob, rtol=8e-2, atol=1e-4))

    assert ok
    print("KERNEL_OK")
</pallas_src>

<mosaic_0001>
module attributes {stable_mosaic.version = 11 : i64} {
  func.func @_nessie_kernel(%arg0: i32, %arg1: memref<16x24xf32, #tpu.memory_space<vmem>>, %arg2: memref<16x256xbf16, #tpu.memory_space<vmem>>, %arg3: memref<16x256xf32, #tpu.memory_space<vmem>>, %arg4: memref<16x256xf32, #tpu.memory_space<vmem>>, %arg5: memref<16x256xf32, #tpu.memory_space<vmem>>) attributes {dimension_semantics = [#tpu.dimension_semantics<parallel>], iteration_bounds = array<i64: 1>, scalar_prefetch = 0 : i64, scratch_operands = 0 : i64, tpu.core_type = #tpu.core_type<tc>, window_params = [{transform_indices = @transform_0, window_bounds = array<i64: 16, 24>}, {transform_indices = @transform_1, window_bounds = array<i64: 16, 256>}, {transform_indices = @transform_2, window_bounds = array<i64: 16, 256>}, {transform_indices = @transform_3, window_bounds = array<i64: 16, 256>}, {transform_indices = @transform_4, window_bounds = array<i64: 16, 256>}]} {
    %c0 = arith.constant 0 : index
    %c0_0 = arith.constant 0 : index
    %0 = vector.load %arg1[%c0, %c0_0] : memref<16x24xf32, #tpu.memory_space<vmem>>, vector<16x24xf32>
    %1 = vector.extract_strided_slice %0 {offsets = [0, 0], sizes = [16, 8], strides = [1, 1]} : vector<16x24xf32> to vector<16x8xf32>
    %2 = vector.extract_strided_slice %0 {offsets = [0, 8], sizes = [16, 8], strides = [1, 1]} : vector<16x24xf32> to vector<16x8xf32>
    %3 = vector.extract_strided_slice %0 {offsets = [0, 16], sizes = [16, 8], strides = [1, 1]} : vector<16x24xf32> to vector<16x8xf32>
    %cst = arith.constant -4.000000e+01 : f32
    %cst_1 = arith.constant 4.000000e+01 : f32
    %4 = vector.broadcast %cst : f32 to vector<16x8xf32>
    %5 = arith.maximumf %4, %3 : vector<16x8xf32>
    %6 = vector.broadcast %cst_1 : f32 to vector<16x8xf32>
    %7 = arith.minimumf %6, %5 : vector<16x8xf32>
    %cst_2 = arith.constant dense<0xFF800000> : vector<16xf32>
    %8 = vector.multi_reduction <maximumf>, %1, %cst_2 [1] : vector<16x8xf32> to vector<16xf32>
    %9 = vector.shape_cast %8 : vector<16xf32> to vector<16x1xf32>
    %10 = vector.broadcast %9 : vector<16x1xf32> to vector<16x8xf32>
    %11 = arith.subf %1, %10 : vector<16x8xf32>
    %12 = math.exp %11 : vector<16x8xf32>
    %cst_3 = arith.constant dense<0.000000e+00> : vector<16xf32>
    %13 = vector.multi_reduction <add>, %12, %cst_3 [1] : vector<16x8xf32> to vector<16xf32>
    %14 = vector.shape_cast %13 : vector<16xf32> to vector<16x1xf32>
    %15 = tpu.reciprocal %14 : vector<16x1xf32> -> vector<16x1xf32>
    %16 = vector.broadcast %15 : vector<16x1xf32> to vector<16x8xf32>
    %17 = arith.mulf %12, %16 : vector<16x8xf32>
    %cst_4 = arith.constant 0.000000e+00 : f32
    %18 = vector.broadcast %cst_4 : f32 to vector<16x8xf32>
    %19 = arith.subf %18, %7 : vector<16x8xf32>
    %20 = math.exp %19 : vector<16x8xf32>
    %21 = arith.mulf %17, %20 : vector<16x8xf32>
    %cst_5 = arith.constant 0.398942292 : f32
    %22 = vector.broadcast %cst_5 : f32 to vector<16x8xf32>
    %23 = arith.mulf %21, %22 : vector<16x8xf32>
    %cst_6 = arith.constant -5.000000e-01 : f32
    %24 = vector.broadcast %cst_6 : f32 to vector<16x8xf32>
    %25 = arith.mulf %24, %20 : vector<16x8xf32>
    %26 = arith.mulf %25, %20 : vector<16x8xf32>
    %c0_7 = arith.constant 0 : index
    %c0_8 = arith.constant 0 : index
    %27 = vector.load %arg2[%c0_7, %c0_8] : memref<16x256xbf16, #tpu.memory_space<vmem>>, vector<16x256xbf16>
    %28 = arith.extf %27 : vector<16x256xbf16> to vector<16x256xf32>
    %cst_9 = arith.constant 0.000000e+00 : f32
    %29 = vector.broadcast %cst_9 : f32 to vector<16x256xf32>
    %30 = vector.extract_strided_slice %2 {offsets = [0, 0], sizes = [16, 1], strides = [1, 1]} : vector<16x8xf32> to vector<16x1xf32>
    %31 = vector.broadcast %30 : vector<16x1xf32> to vector<16x256xf32>
    %32 = arith.subf %28, %31 : vector<16x256xf32>
    %33 = vector.extract_strided_slice %26 {offsets = [0, 0], sizes = [16, 1], strides = [1, 1]} : vector<16x8xf32> to vector<16x1xf32>
    %34 = vector.broadcast %33 : vector<16x1xf32> to vector<16x256xf32>
    %35 = arith.mulf %34, %32 : vector<16x256xf32>
    %36 = arith.mulf %35, %32 : vector<16x256xf32>
    %37 = math.exp %36 : vector<16x256xf32>
    %38 = vector.extract_strided_slice %23 {offsets = [0, 0], sizes = [16, 1], strides = [1, 1]} : vector<16x8xf32> to vector<16x1xf32>
    %39 = vector.broadcast %38 : vector<16x1xf32> to vector<16x256xf32>
    %40 = arith.mulf %39, %37 : vector<16x256xf32>
    %41 = arith.addf %29, %40 : vector<16x256xf32>
    %42 = vector.extract_strided_slice %2 {offsets = [0, 1], sizes = [16, 1], strides = [1, 1]} : vector<16x8xf32> to vector<16x1xf32>
    %43 = vector.broadcast %42 : vector<16x1xf32> to vector<16x256xf32>
    %44 = arith.subf %28, %43 : vector<16x256xf32>
    %45 = vector.extract_strided_slice %26 {offsets = [0, 1], sizes = [16, 1], strides = [1, 1]} : vector<16x8xf32> to vector<16x1xf32>
    %46 = vector.broadcast %45 : vector<16x1xf32> to vector<16x256xf32>
    %47 = arith.mulf %46, %44 : vector<16x256xf32>
    %48 = arith.mulf %47, %44 : vector<16x256xf32>
    %49 = math.exp %48 : vector<16x256xf32>
    %50 = vector.extract_strided_slice %23 {offsets = [0, 1], sizes = [16, 1], strides = [1, 1]} : vector<16x8xf32> to vector<16x1xf32>
    %51 = vector.broadcast %50 : vector<16x1xf32> to vector<16x256xf32>
    %52 = arith.mulf %51, %49 : vector<16x256xf32>
    %53 = arith.addf %41, %52 : vector<16x256xf32>
    %54 = vector.extract_strided_slice %2 {offsets = [0, 2], sizes = [16, 1], strides = [1, 1]} : vector<16x8xf32> to vector<16x1xf32>
    %55 = vector.broadcast %54 : vector<16x1xf32> to vector<16x256xf32>
    %56 = arith.subf %28, %55 : vector<16x256xf32>
    %57 = vector.extract_strided_slice %26 {offsets = [0, 2], sizes = [16, 1], strides = [1, 1]} : vector<16x8xf32> to vector<16x1xf32>
    %58 = vector.broadcast %57 : vector<16x1xf32> to vector<16x256xf32>
    %59 = arith.mulf %58, %56 : vector<16x256xf32>
    %60 = arith.mulf %59, %56 : vector<16x256xf32>
    %61 = math.exp %60 : vector<16x256xf32>
    %62 = vector.extract_strided_slice %23 {offsets = [0, 2], sizes = [16, 1], strides = [1, 1]} : vector<16x8xf32> to vector<16x1xf32>
    %63 = vector.broadcast %62 : vector<16x1xf32> to vector<16x256xf32>
    %64 = arith.mulf %63, %61 : vector<16x256xf32>
    %65 = arith.addf %53, %64 : vector<16x256xf32>
    %66 = vector.extract_strided_slice %2 {offsets = [0, 3], sizes = [16, 1], strides = [1, 1]} : vector<16x8xf32> to vector<16x1xf32>
    %67 = vector.broadcast %66 : vector<16x1xf32> to vector<16x256xf32>
    %68 = arith.subf %28, %67 : vector<16x256xf32>
    %69 = vector.extract_strided_slice %26 {offsets = [0, 3], sizes = [16, 1], strides = [1, 1]} : vector<16x8xf32> to vector<16x1xf32>
    %70 = vector.broadcast %69 : vector<16x1xf32> to vector<16x256xf32>
    %71 = arith.mulf %70, %68 : vector<16x256xf32>
    %72 = arith.mulf %71, %68 : vector<16x256xf32>
    %73 = math.exp %72 : vector<16x256xf32>
    %74 = vector.extract_strided_slice %23 {offsets = [0, 3], sizes = [16, 1], strides = [1, 1]} : vector<16x8xf32> to vector<16x1xf32>
    %75 = vector.broadcast %74 : vector<16x1xf32> to vector<16x256xf32>
    %76 = arith.mulf %75, %73 : vector<16x256xf32>
    %77 = arith.addf %65, %76 : vector<16x256xf32>
    %78 = vector.extract_strided_slice %2 {offsets = [0, 4], sizes = [16, 1], strides = [1, 1]} : vector<16x8xf32> to vector<16x1xf32>
    %79 = vector.broadcast %78 : vector<16x1xf32> to vector<16x256xf32>
    %80 = arith.subf %28, %79 : vector<16x256xf32>
    %81 = vector.extract_strided_slice %26 {offsets = [0, 4], sizes = [16, 1], strides = [1, 1]} : vector<16x8xf32> to vector<16x1xf32>
    %82 = vector.broadcast %81 : vector<16x1xf32> to vector<16x256xf32>
    %83 = arith.mulf %82, %80 : vector<16x256xf32>
    %84 = arith.mulf %83, %80 : vector<16x256xf32>
    %85 = math.exp %84 : vector<16x256xf32>
    %86 = vector.extract_strided_slice %23 {offsets = [0, 4], sizes = [16, 1], strides = [1, 1]} : vector<16x8xf32> to vector<16x1xf32>
    %87 = vector.broadcast %86 : vector<16x1xf32> to vector<16x256xf32>
    %88 = arith.mulf %87, %85 : vector<16x256xf32>
    %89 = arith.addf %77, %88 : vector<16x256xf32>
    %90 = vector.extract_strided_slice %2 {offsets = [0, 5], sizes = [16, 1], strides = [1, 1]} : vector<16x8xf32> to vector<16x1xf32>
    %91 = vector.broadcast %90 : vector<16x1xf32> to vector<16x256xf32>
    %92 = arith.subf %28, %91 : vector<16x256xf32>
    %93 = vector.extract_strided_slice %26 {offsets = [0, 5], sizes = [16, 1], strides = [1, 1]} : vector<16x8xf32> to vector<16x1xf32>
    %94 = vector.broadcast %93 : vector<16x1xf32> to vector<16x256xf32>
    %95 = arith.mulf %94, %92 : vector<16x256xf32>
    %96 = arith.mulf %95, %92 : vector<16x256xf32>
    %97 = math.exp %96 : vector<16x256xf32>
    %98 = vector.extract_strided_slice %23 {offsets = [0, 5], sizes = [16, 1], strides = [1, 1]} : vector<16x8xf32> to vector<16x1xf32>
    %99 = vector.broadcast %98 : vector<16x1xf32> to vector<16x256xf32>
    %100 = arith.mulf %99, %97 : vector<16x256xf32>
    %101 = arith.addf %89, %100 : vector<16x256xf32>
    %102 = vector.extract_strided_slice %2 {offsets = [0, 6], sizes = [16, 1], strides = [1, 1]} : vector<16x8xf32> to vector<16x1xf32>
    %103 = vector.broadcast %102 : vector<16x1xf32> to vector<16x256xf32>
    %104 = arith.subf %28, %103 : vector<16x256xf32>
    %105 = vector.extract_strided_slice %26 {offsets = [0, 6], sizes = [16, 1], strides = [1, 1]} : vector<16x8xf32> to vector<16x1xf32>
    %106 = vector.broadcast %105 : vector<16x1xf32> to vector<16x256xf32>
    %107 = arith.mulf %106, %104 : vector<16x256xf32>
    %108 = arith.mulf %107, %104 : vector<16x256xf32>
    %109 = math.exp %108 : vector<16x256xf32>
    %110 = vector.extract_strided_slice %23 {offsets = [0, 6], sizes = [16, 1], strides = [1, 1]} : vector<16x8xf32> to vector<16x1xf32>
    %111 = vector.broadcast %110 : vector<16x1xf32> to vector<16x256xf32>
    %112 = arith.mulf %111, %109 : vector<16x256xf32>
    %113 = arith.addf %101, %112 : vector<16x256xf32>
    %114 = vector.extract_strided_slice %2 {offsets = [0, 7], sizes = [16, 1], strides = [1, 1]} : vector<16x8xf32> to vector<16x1xf32>
    %115 = vector.broadcast %114 : vector<16x1xf32> to vector<16x256xf32>
    %116 = arith.subf %28, %115 : vector<16x256xf32>
    %117 = vector.extract_strided_slice %26 {offsets = [0, 7], sizes = [16, 1], strides = [1, 1]} : vector<16x8xf32> to vector<16x1xf32>
    %118 = vector.broadcast %117 : vector<16x1xf32> to vector<16x256xf32>
    %119 = arith.mulf %118, %116 : vector<16x256xf32>
    %120 = arith.mulf %119, %116 : vector<16x256xf32>
    %121 = math.exp %120 : vector<16x256xf32>
    %122 = vector.extract_strided_slice %23 {offsets = [0, 7], sizes = [16, 1], strides = [1, 1]} : vector<16x8xf32> to vector<16x1xf32>
    %123 = vector.broadcast %122 : vector<16x1xf32> to vector<16x256xf32>
    %124 = arith.mulf %123, %121 : vector<16x256xf32>
    %125 = arith.addf %113, %124 : vector<16x256xf32>
    %c0_10 = arith.constant 0 : index
    %c0_11 = arith.constant 0 : index
    %126 = vector.load %arg4[%c0_10, %c0_11] : memref<16x256xf32, #tpu.memory_space<vmem>>, vector<16x256xf32>
    tpu.vector_store %arg4[%c0_10, %c0_11], %125 {strides = array<i32>} : memref<16x256xf32, #tpu.memory_space<vmem>>, vector<16x256xf32>,
    %c0_12 = arith.constant 0 : index
    %c0_13 = arith.constant 0 : index
    %127 = vector.load %arg3[%c0_12, %c0_13] : memref<16x256xf32, #tpu.memory_space<vmem>>, vector<16x256xf32>
    %cst_14 = arith.constant dense<0xFF800000> : vector<16xf32>
    %128 = vector.multi_reduction <maximumf>, %127, %cst_14 [1] : vector<16x256xf32> to vector<16xf32>
    %129 = vector.shape_cast %128 : vector<16xf32> to vector<16x1xf32>
    %130 = vector.broadcast %129 : vector<16x1xf32> to vector<16x256xf32>
    %131 = arith.subf %127, %130 : vector<16x256xf32>
    %132 = math.exp %131 : vector<16x256xf32>
    %cst_15 = arith.constant dense<0.000000e+00> : vector<16xf32>
    %133 = vector.multi_reduction <add>, %132, %cst_15 [1] : vector<16x256xf32> to vector<16xf32>
    %134 = vector.shape_cast %133 : vector<16xf32> to vector<16x1xf32>
    %135 = tpu.reciprocal %134 : vector<16x1xf32> -> vector<16x1xf32>
    %136 = vector.broadcast %135 : vector<16x1xf32> to vector<16x256xf32>
    %137 = arith.mulf %132, %136 : vector<16x256xf32>
    %c0_16 = arith.constant 0 : index
    %c0_17 = arith.constant 0 : index
    %138 = vector.load %arg5[%c0_16, %c0_17] : memref<16x256xf32, #tpu.memory_space<vmem>>, vector<16x256xf32>
    tpu.vector_store %arg5[%c0_16, %c0_17], %137 {strides = array<i32>} : memref<16x256xf32, #tpu.memory_space<vmem>>, vector<16x256xf32>,
    return
  }
  func.func @transform_0(%arg0: i32) -> (i32, i32) {
    %c0_i32 = arith.constant 0 : i32
    %c0_i32_0 = arith.constant 0 : i32
    return %arg0, %c0_i32 : i32, i32
  }
  func.func @transform_1(%arg0: i32) -> (i32, i32) {
    %c0_i32 = arith.constant 0 : i32
    %c0_i32_0 = arith.constant 0 : i32
    return %arg0, %c0_i32 : i32, i32
  }
  func.func @transform_2(%arg0: i32) -> (i32, i32) {
    %c0_i32 = arith.constant 0 : i32
    %c0_i32_0 = arith.constant 0 : i32
    return %arg0, %c0_i32 : i32, i32
  }
  func.func @transform_3(%arg0: i32) -> (i32, i32) {
    %c0_i32 = arith.constant 0 : i32
    %c0_i32_0 = arith.constant 0 : i32
    return %arg0, %c0_i32 : i32, i32
  }
  func.func @transform_4(%arg0: i32) -> (i32, i32) {
    %c0_i32 = arith.constant 0 : i32
    %c0_i32_0 = arith.constant 0 : i32
    return %arg0, %c0_i32 : i32, i32
  }
}

</mosaic_0001>

<bundles_post_ra>
// kernel: tpu_custom_call.1
= control target key start
LH: loop header
LB: loop body
LE: loop exit
PB: predicated region body
PF: predicated region fallthrough
CT: control target
= control target key end

     0   :  { %10 = vsyncpa [#allocation3], 0  ;;  %s1262_s0 = inlined_call_operand.hbm [shape: f32[16,24], index: 0, kind: input, shape index: {}]   ;;  %s1263_s1 = inlined_call_operand.hbm [shape: bf16[16,256], index: 1, kind: input, shape index: {}]   ;;  %s1264_s2 = inlined_call_operand.hbm [shape: f32[16,256], index: 2, kind: input, shape index: {}]   ;;  %s1265_s3 = inlined_call_operand.hbm [shape: f32[16,256], index: 3, kind: output, shape index: {0}]   ;;  %s1266_s4 = inlined_call_operand.hbm [shape: f32[16,256], index: 4, kind: output, shape index: {1}]  }
   0x1   :  { %11 = vsyncpa [#allocation6], 0 }
   0x2   :  { %12 = vsyncpa [#allocation4], 0 }
   0x3   :  { %13 = vsyncpa [#allocation10], 0  ;;  %s893_s15 = smov [#allocation5]   ;;  %s894_s17 = smov [#allocation2]  }
   0x4   :  { %s31_s16 = sshll.u32 %s893_s15, 4  ;;  %s19_s18 = sshll.u32 %s894_s17, 4  ;;  %s32_s16 = int_to_ptr.vmem [resolvable:$true] %s31_s16  ;;  %s952_s18 = int_to_ptr.vmem [resolvable:$true] %s19_s18 }
   0x5   :  { %s775_s21 = scalar_lea.hbm %s1263_s1, 256 }
   0x6   :  { %p776_p0 = scmp.ne.s32.totalorder %s1263_s1, %s775_s21  ;;  %p779_p1 = scmp.lt.u32.totalorder %s775_s21, %s1263_s1 }
   0x8   :  { %p781_p2 = pnand %p779_p1, %p776_p0 }
   0xa   :  { %784 = shalt.err (!%p781_p2)
}
   0xb   :  { %s785_s26 = scalar_lea.vmem %s32_s16, 256  ;;  %p790_p4 = scmp.lt.s32.totalorder %s32_s16, %s32_s16 }
   0xc   :  { %p786_p3 = scmp.ne.s32.totalorder %s32_s16, %s785_s26  ;;  %p791_p5 = scmp.lt.s32.totalorder %s785_s26, %s785_s26 }
   0xe   :  { %p792_p6 = por %p791_p5, %p790_p4 }
  0x10   :  { %p793_p7 = pnand %p792_p6, %p786_p3 }
  0x12   :  { %796 = shalt.err (!%p793_p7)
}
  0x13   :  { %s895_s27 = smov 128   ;;  %s896_s28 = smov 8  }
  0x14   :  { %37 = dma.hbm_to_vmem [thread:$0]  %s1263_s1, 256, %s32_s16, [#allocation6], %s895_s27, %s895_s27, %s896_s28  }
  0x15   :  { %s797_s7 = scalar_lea.hbm %s1262_s0, 256 }
  0x16   :  { %p798_p8 = scmp.ne.s32.totalorder %s1262_s0, %s797_s7  ;;  %p801_p9 = scmp.lt.u32.totalorder %s797_s7, %s1262_s0 }
  0x18   :  { %p803_p10 = pnand %p801_p9, %p798_p8 }
  0x1a   :  { %806 = shalt.err (!%p803_p10)
}
  0x1b   :  { %s807_s12 = scalar_lea.vmem %s952_s18, 256  ;;  %p812_p12 = scmp.lt.s32.totalorder %s952_s18, %s952_s18 }
  0x1c   :  { %p808_p11 = scmp.ne.s32.totalorder %s952_s18, %s807_s12  ;;  %p813_p13 = scmp.lt.s32.totalorder %s807_s12, %s807_s12 }
  0x1e   :  { %p814_p0 = por %p813_p13, %p812_p12 }
  0x20   :  { %p815_p1 = pnand %p814_p0, %p808_p11 }
  0x22   :  { %818 = shalt.err (!%p815_p1)
}
  0x23   :  { %25 = dma.hbm_to_vmem [thread:$0]  %s1262_s0, 256, %s952_s18, [#allocation3], %s895_s27, %s895_s27, %s896_s28  }
  0x24   :  { %s897_s14 = smov [#allocation7]   ;;  %s819_s19 = scalar_lea.hbm %s1264_s2, 512 }
  0x25   :  { %s43_s15 = sshll.u32 %s897_s14, 4  ;;  %p820_p2 = scmp.ne.s32.totalorder %s1264_s2, %s819_s19  ;;  %s44_s15 = int_to_ptr.vmem [resolvable:$true] %s43_s15 }
  0x26   :  { %p823_p3 = scmp.lt.u32.totalorder %s819_s19, %s1264_s2 }
  0x28   :  { %p825_p4 = pnand %p823_p3, %p820_p2 }
  0x2a   :  { %828 = shalt.err (!%p825_p4)
}
  0x2b   :  { %s829_s24 = scalar_lea.vmem %s44_s15, 512  ;;  %p834_p6 = scmp.lt.s32.totalorder %s44_s15, %s44_s15 }
  0x2c   :  { %p830_p5 = scmp.ne.s32.totalorder %s44_s15, %s829_s24  ;;  %p835_p7 = scmp.lt.s32.totalorder %s829_s24, %s829_s24 }
  0x2e   :  { %p836_p8 = por %p835_p7, %p834_p6 }
  0x30   :  { %p837_p9 = pnand %p836_p8, %p830_p5 }
  0x32   :  { %840 = shalt.err (!%p837_p9)
}
  0x33   :  { %s898_s0 = smov 256   ;;  %s899_s18 = smov 16  }
  0x34   :  { %49 = dma.hbm_to_vmem [thread:$0]  %s1264_s2, 512, %s44_s15, [#allocation6], %s898_s0, %s898_s0, %s899_s18  }
  0x35   :  { %885 = dma.done.wait [#allocation3], 256  }
  0x36   :  { %886 = vsyncadd [#allocation3], 4294967040 }
  0x37   :  { %887 = dma.done.wait [#allocation6], 768  }
  0x38   :  { %888 = vsyncadd [#allocation6], 4294966528  ;;  %v900_v0 = vmov 8   ;;  %v901_v1 = vmov 16   ;;  %vm65_vm0 = vcmask 64512   ;;  %v998_v2 = vld [vmem:[#allocation2] sm:$0xff] }
  0x39   :  { %650 = vset.pattern.permute.xlu1 %v900_v0  ;;  %651 = vset.pattern.permute.xlu0 %v901_v1  ;;  %v1000_v3 = vld [vmem:[#allocation2 + $0x8] sm:$0xff]  ;;  %v66_v4 = vsel %vm65_vm0, %v998_v2, -inf  ;;  %v614_v6 = vclamps-f32 %v998_v2, 40.0  ;;  %s902_s2 = smov 112   ;;  %v903_v17 = vmov 9   ;;  %v904_v19 = vmov 17  }
  0x3a   :  { %118 = vperm.xlu1 %650, %v998_v2   ;;  %v615_v5 = vclamps-f32 %v1000_v3, 40.0  ;;  %67 = vmax.xlane.f32.xlu0 %v66_v4  ;;  %v69_v7 = vsel %vm65_vm0, %v1000_v3, -inf  ;;  %v905_v20 = vmov 10   ;;  %v906_v21 = vmov 11   ;;  %v1020_v22 = vld [vmem:[#allocation7 + $0x10] sm:$0xff]  ;;  %v1022_v23 = vld [vmem:[#allocation7 + $0x18] sm:$0xff] }
  0x3b   :  { %v88_v9 = vsub.f32 0.0, %v614_v6  ;;  %v549_v24 = vmax.f32 %v1020_v22, %v1022_v23  ;;  %v1026_v25 = vld [vmem:[#allocation7] sm:$0xff]  ;;  %v1028_v26 = vld [vmem:[#allocation7 + $0x8] sm:$0xff]  ;;  %v907_v28 = vmov 19   ;;  %v908_v29 = vmov 18   ;;  %v111_v39 = vld [vmem:[#allocation5 + $0x8] sm:$0xff] }
  0x3c   :  { %v89_v8 = vsub.f32 0.0, %v615_v5  ;;  %v546_v27 = vmax.f32 %v1026_v25, %v1028_v26  ;;  %v909_v30 = vmov 20   ;;  %v910_v31 = vmov 13   ;;  %v110_v50 = vld [vmem:[#allocation5] sm:$0xff]  ;;  %s925_s27 = smov [#allocation9]  }
  0x3d   :  { %v90_v11 = vmul.f32 1.442695, %v88_v9  ;;  %v911_v32 = vmov 14   ;;  %v912_v33 = vmov 22   ;;  %v913_v34 = vmov 12   ;;  %s597_s28 = sshll.u32 %s925_s27, 4  ;;  %s598_s28 = int_to_ptr.vmem [resolvable:$true] %s597_s28 }
  0x3e   :  { %123 = vperm.xlu1 %650, %v1000_v3   ;;  %v92_v10 = vmul.f32 1.442695, %v89_v8  ;;  %70 = vmax.xlane.f32.xlu0 %v69_v7  ;;  %v914_v35 = vmov 23   ;;  %v915_v37 = vmov 21   ;;  %v1051_v41 = vunpack.c.l.bf16 %v111_v39  ;;  %s841_s29 = scalar_lea.vmem %s598_s28, 512  ;;  %p846_p11 = scmp.lt.s32.totalorder %s598_s28, %s598_s28 }
  0x3f   :  { %v1053_v42 = vunpack.c.h.bf16 %v111_v39  ;;  %v1067_v54 = vunpack.c.l.bf16 %v110_v50  ;;  %v1069_v55 = vunpack.c.h.bf16 %v110_v50  ;;  %v916_v57 = vmov 15   ;;  %p842_p10 = scmp.ne.s32.totalorder %s598_s28, %s841_s29  ;;  %p847_p12 = scmp.lt.s32.totalorder %s841_s29, %s841_s29 }
  0x40   :  { %687 = vpow2.f32 %v92_v10 }
  0x41   :  { %689 = vpow2.f32 %v90_v11  ;;  %p848_p13 = por %p847_p12, %p846_p11 }
  0x42   :  { %652 = vset.pattern.permute.xlu1 %v901_v1 }
  0x43   :  { %p849_p0 = pnand %p848_p13, %p842_p10 }
  0x4a   :  { %v688_v12 = vpop.eup %687 }
  0x4b   :  { %98 = vrot.lane.b32.xlu1 %v688_v12, %s902_s2  ;;  %v107_v13 = vmul.f32 -0.5, %v688_v12  ;;  %v690_v15 = vpop.eup %689 }
  0x4c   :  { %v106_v16 = vmul.f32 -0.5, %v690_v15 }
  0x4d   :  { %v1010_v14 = vmul.f32 %v688_v12, %v107_v13 }
  0x4e   :  { %v1014_v18 = vmul.f32 %v690_v15, %v106_v16 }
  0x4f   :  { %137 = vperm.xlu1 %652, %v1010_v14  }
  0x53   :  { %653 = vset.pattern.permute.xlu1 %v903_v17 }
  0x54   :  { %175 = vperm.xlu1 %653, %v998_v2   ;;  %96 = vrot.lane.b32.xlu0 %v690_v15, %s902_s2 }
  0x58   :  { %179 = vperm.xlu1 %653, %v1000_v3   ;;  %132 = vperm.xlu0 %651, %v1014_v18  }
  0x5c   :  { %655 = vset.pattern.permute.xlu1 %v904_v19  ;;  %654 = vset.pattern.permute.xlu0 %v904_v19 }
  0x5d   :  { %191 = vperm.xlu1 %655, %v1010_v14   ;;  %187 = vperm.xlu0 %654, %v1014_v18  }
  0x61   :  { %656 = vset.pattern.permute.xlu1 %v905_v20  ;;  %658 = vset.pattern.permute.xlu0 %v906_v21 }
  0x7c   :  { %550 = vmax.xlane.f32.xlu0 %v549_v24 }
  0x81   :  { %547 = vmax.xlane.f32.xlu1 %v546_v27 }
  0x92   :  { %227 = vperm.xlu1 %656, %v998_v2   ;;  %279 = vperm.xlu0 %658, %v998_v2  }
  0x96   :  { %231 = vperm.xlu1 %656, %v1000_v3   ;;  %661 = vset.pattern.permute.xlu0 %v907_v28 }
  0x97   :  { %295 = vperm.xlu0 %661, %v1010_v14  }
  0x9a   :  { %657 = vset.pattern.permute.xlu1 %v908_v29 }
  0x9b   :  { %239 = vperm.xlu1 %657, %v1014_v18   ;;  %663 = vset.pattern.permute.xlu0 %v909_v30 }
  0x9c   :  { %343 = vperm.xlu0 %663, %v1014_v18  }
  0x9f   :  { %243 = vperm.xlu1 %657, %v1010_v14  }
  0xa0   :  { %666 = vset.pattern.permute.xlu0 %v910_v31 }
  0xa1   :  { %387 = vperm.xlu0 %666, %v1000_v3  }
  0xa3   :  { %659 = vset.pattern.permute.xlu1 %v906_v21 }
  0xa4   :  { %283 = vperm.xlu1 %659, %v1000_v3  }
  0xa5   :  { %668 = vset.pattern.permute.xlu0 %v911_v32 }
  0xa6   :  { %435 = vperm.xlu0 %668, %v998_v2  }
  0xa8   :  { %660 = vset.pattern.permute.xlu1 %v907_v28 }
  0xa9   :  { %291 = vperm.xlu1 %660, %v1014_v18  }
  0xaa   :  { %671 = vset.pattern.permute.xlu0 %v912_v33 }
  0xab   :  { %451 = vperm.xlu0 %671, %v1010_v14  }
  0xad   :  { %662 = vset.pattern.permute.xlu1 %v913_v34 }
  0xae   :  { %331 = vperm.xlu1 %662, %v998_v2  }
  0xaf   :  { %673 = vset.pattern.permute.xlu0 %v914_v35 }
  0xb0   :  { %499 = vperm.xlu0 %673, %v1014_v18  }
  0xb2   :  { %335 = vperm.xlu1 %662, %v1000_v3  }
  0xb6   :  { %664 = vset.pattern.permute.xlu1 %v909_v30 }
  0xb7   :  { %347 = vperm.xlu1 %664, %v1010_v14  }
  0xb9   :  { %v119_v36 = vpop.permute.xlu1 %118 }
  0xba   :  { %v126_v58 = vsub.f32 %v1067_v54, %v119_v36  ;;  %v127_v59 = vsub.f32 %v1069_v55, %v119_v36 }
  0xbb   :  { %665 = vset.pattern.permute.xlu1 %v910_v31 }
  0xbc   :  { %383 = vperm.xlu1 %665, %v998_v2  }
  0xbd   :  { %v124_v38 = vpop.permute.xlu1 %123 }
  0xbe   :  { %v128_v45 = vsub.f32 %v1051_v41, %v124_v38  ;;  %v129_v46 = vsub.f32 %v1053_v42, %v124_v38 }
  0xc0   :  { %667 = vset.pattern.permute.xlu1 %v915_v37 }
  0xc1   :  { %395 = vperm.xlu1 %667, %v1014_v18   ;;  %v1055_v43 = vpop.permute.xlu1 %98 }
  0xc5   :  { %399 = vperm.xlu1 %667, %v1010_v14  }
  0xc7   :  { %v68_v40 = vpop.xlane.xlu0 %67 }
  0xc8   :  { %v72_v19 = vsub.f32 %v998_v2, %v68_v40 }
  0xc9   :  { %669 = vset.pattern.permute.xlu1 %v911_v32 }
  0xca   :  { %439 = vperm.xlu1 %669, %v1000_v3   ;;  %v74_v20 = vmul.f32 1.442695, %v72_v19 }
  0xcb   :  { %v71_v44 = vpop.xlane.xlu0 %70 }
  0xcc   :  { %v73_v21 = vsub.f32 %v1000_v3, %v71_v44  ;;  %691 = vpow2.f32 %v74_v20 }
  0xce   :  { %v138_v47 = vpop.permute.xlu1 %137  ;;  %670 = vset.pattern.permute.xlu1 %v912_v33  ;;  %v76_v24 = vmul.f32 1.442695, %v73_v21 }
  0xcf   :  { %v142_v48 = vmul.f32 %v138_v47, %v128_v45  ;;  %v143_v49 = vmul.f32 %v138_v47, %v129_v46  ;;  %447 = vperm.xlu1 %670, %v1014_v18   ;;  %v1065_v53 = vpop.permute.xlu0 %96  ;;  %v917_v47 = vmov 0  }
  0xd0   :  { %693 = vpow2.f32 %v76_v24  ;;  %676 = vset.pattern.permute.xlu0 %v917_v47 }
  0xd1   :  { %v1061_v51 = vmul.f32 %v142_v48, %v128_v45  ;;  %v1063_v52 = vmul.f32 %v143_v49, %v129_v46 }
  0xd3   :  { %v176_v56 = vpop.permute.xlu1 %175  ;;  %672 = vset.pattern.permute.xlu1 %v916_v57 }
  0xd4   :  { %487 = vperm.xlu1 %672, %v998_v2   ;;  %v182_v6 = vsub.f32 %v1067_v54, %v176_v56  ;;  %v183_v7 = vsub.f32 %v1069_v55, %v176_v56 }
  0xd6   :  { %v1093_v27 = vpop.eup %691 }
  0xd7   :  { %v180_v60 = vpop.permute.xlu1 %179  ;;  %v133_v61 = vpop.permute.xlu0 %132  ;;  %v78_v28 = vsel %vm65_vm0, %v1093_v27, 0.0 }
  0xd8   :  { %491 = vperm.xlu1 %672, %v1000_v3   ;;  %v140_v62 = vmul.f32 %v133_v61, %v126_v58  ;;  %v141_v63 = vmul.f32 %v133_v61, %v127_v59  ;;  %v184_v0 = vsub.f32 %v1051_v41, %v180_v60  ;;  %v185_v1 = vsub.f32 %v1053_v42, %v180_v60 }
  0xda   :  { %v1077_v4 = vmul.f32 %v140_v62, %v126_v58  ;;  %v1079_v5 = vmul.f32 %v141_v63, %v127_v59  ;;  %v1097_v29 = vpop.eup %693 }
  0xdb   :  { %v81_v30 = vsel %vm65_vm0, %v1097_v29, 0.0 }
  0xdc   :  { %v192_v8 = vpop.permute.xlu1 %191  ;;  %674 = vset.pattern.permute.xlu1 %v914_v35  ;;  %v188_v11 = vpop.permute.xlu0 %187 }
  0xdd   :  { %v196_v9 = vmul.f32 %v192_v8, %v184_v0  ;;  %v197_v10 = vmul.f32 %v192_v8, %v185_v1  ;;  %v194_v12 = vmul.f32 %v188_v11, %v182_v6  ;;  %v195_v13 = vmul.f32 %v188_v11, %v183_v7 }
  0xdf   :  { %v1083_v15 = vmul.f32 %v196_v9, %v184_v0  ;;  %v1085_v16 = vmul.f32 %v197_v10, %v185_v1  ;;  %v1087_v17 = vmul.f32 %v194_v12, %v182_v6  ;;  %v1089_v18 = vmul.f32 %v195_v13, %v183_v7 }
  0xfc   :  { %79 = vadd.xlane.f32.xlu1 %v78_v28 }
 0x100   :  { %82 = vadd.xlane.f32.xlu1 %v81_v30 }
 0x109   :  { %v551_v31 = vpop.xlane.xlu0 %550 }
 0x10a   :  { %v554_v2 = vsub.f32 %v1020_v22, %v551_v31  ;;  %v555_v3 = vsub.f32 %v1022_v23, %v551_v31 }
 0x10c   :  { %v560_v32 = vmul.f32 1.442695, %v554_v2  ;;  %v562_v33 = vmul.f32 1.442695, %v555_v3 }
 0x10e   :  { %v548_v34 = vpop.xlane.xlu1 %547  ;;  %695 = vpow2.f32 %v560_v32 }
 0x10f   :  { %697 = vpow2.f32 %v562_v33  ;;  %v552_v46 = vsub.f32 %v1026_v25, %v548_v34  ;;  %v553_v57 = vsub.f32 %v1028_v26, %v548_v34 }
 0x111   :  { %503 = vperm.xlu1 %674, %v1010_v14   ;;  %v280_v56 = vpop.permute.xlu0 %279  ;;  %v556_v61 = vmul.f32 1.442695, %v552_v46  ;;  %v558_v63 = vmul.f32 1.442695, %v553_v57 }
 0x112   :  { %v228_v35 = vpop.permute.xlu1 %227  ;;  %v286_v8 = vsub.f32 %v1067_v54, %v280_v56  ;;  %v287_v26 = vsub.f32 %v1069_v55, %v280_v56 }
 0x113   :  { %v234_v38 = vsub.f32 %v1067_v54, %v228_v35  ;;  %v235_v39 = vsub.f32 %v1069_v55, %v228_v35  ;;  %699 = vpow2.f32 %v556_v61 }
 0x114   :  { %701 = vpow2.f32 %v558_v63 }
 0x115   :  { %675 = vset.pattern.permute.xlu1 %v917_v47 }
 0x116   :  { %v232_v36 = vpop.permute.xlu1 %231  ;;  %v296_v1 = vpop.permute.xlu0 %295 }
 0x117   :  { %v236_v14 = vsub.f32 %v1051_v41, %v232_v36  ;;  %v237_v48 = vsub.f32 %v1053_v42, %v232_v36 }
 0x118   :  { %v1104_v37 = vpop.eup %695 }
 0x119   :  { %v1108_v40 = vpop.eup %697 }
 0x11a   :  { %v240_v22 = vpop.permute.xlu1 %239  ;;  %v567_v45 = vadd.f32 %v1108_v40, %v1104_v37 }
 0x11b   :  { %v246_v44 = vmul.f32 %v240_v22, %v234_v38  ;;  %v247_v23 = vmul.f32 %v240_v22, %v235_v39  ;;  %v344_v30 = vpop.permute.xlu0 %343 }
 0x11c   :  { %568 = vadd.xlane.f32.xlu0 %v567_v45 }
 0x11d   :  { %v1115_v49 = vmul.f32 %v246_v44, %v234_v38  ;;  %v1117_v50 = vmul.f32 %v247_v23, %v235_v39  ;;  %v1138_v3 = vpop.eup %699 }
 0x11e   :  { %v244_v58 = vpop.permute.xlu1 %243  ;;  %v1140_v32 = vpop.eup %701 }
 0x11f   :  { %v248_v59 = vmul.f32 %v244_v58, %v236_v14  ;;  %v249_v60 = vmul.f32 %v244_v58, %v237_v48  ;;  %v564_v39 = vadd.f32 %v1140_v32, %v1138_v3 }
 0x120   :  { %v388_v56 = vpop.permute.xlu0 %387 }
 0x121   :  { %v1120_v25 = vmul.f32 %v248_v59, %v236_v14  ;;  %v1122_v62 = vmul.f32 %v249_v60, %v237_v48  ;;  %v392_v63 = vsub.f32 %v1051_v41, %v388_v56 }
 0x123   :  { %v284_v0 = vpop.permute.xlu1 %283 }
 0x124   :  { %v288_v6 = vsub.f32 %v1051_v41, %v284_v0  ;;  %v289_v7 = vsub.f32 %v1053_v42, %v284_v0  ;;  %v393_v0 = vsub.f32 %v1053_v42, %v388_v56 }
 0x126   :  { %v300_v9 = vmul.f32 %v296_v1, %v288_v6  ;;  %v301_v10 = vmul.f32 %v296_v1, %v289_v7 }
 0x128   :  { %v1128_v11 = vmul.f32 %v300_v9, %v288_v6  ;;  %v1130_v12 = vmul.f32 %v301_v10, %v289_v7  ;;  %v292_v13 = vpop.permute.xlu1 %291  ;;  %v436_v7 = vpop.permute.xlu0 %435 }
 0x129   :  { %v298_v19 = vmul.f32 %v292_v13, %v286_v8  ;;  %v299_v20 = vmul.f32 %v292_v13, %v287_v26 }
 0x12b   :  { %v1132_v21 = vmul.f32 %v298_v19, %v286_v8  ;;  %v1134_v24 = vmul.f32 %v299_v20, %v287_v26 }
 0x12c   :  { %v452_v20 = vpop.permute.xlu0 %451 }
 0x12d   :  { %v332_v28 = vpop.permute.xlu1 %331 }
 0x12e   :  { %v338_v31 = vsub.f32 %v1067_v54, %v332_v28  ;;  %v339_v2 = vsub.f32 %v1069_v55, %v332_v28 }
 0x130   :  { %v350_v33 = vmul.f32 %v344_v30, %v338_v31  ;;  %v351_v34 = vmul.f32 %v344_v30, %v339_v2 }
 0x131   :  { %v336_v35 = vpop.permute.xlu1 %335 }
 0x132   :  { %v1142_v36 = vmul.f32 %v350_v33, %v338_v31  ;;  %v1144_v38 = vmul.f32 %v351_v34, %v339_v2  ;;  %v340_v22 = vsub.f32 %v1051_v41, %v336_v35  ;;  %v341_v44 = vsub.f32 %v1053_v42, %v336_v35 }
 0x133   :  { %v442_v31 = vsub.f32 %v1067_v54, %v436_v7  ;;  %v443_v2 = vsub.f32 %v1069_v55, %v436_v7 }
 0x135   :  { %565 = vadd.xlane.f32.xlu1 %v564_v39 }
 0x136   :  { %v348_v23 = vpop.permute.xlu1 %347 }
 0x137   :  { %v352_v45 = vmul.f32 %v348_v23, %v340_v22  ;;  %v353_v46 = vmul.f32 %v348_v23, %v341_v44 }
 0x139   :  { %v1150_v47 = vmul.f32 %v352_v45, %v340_v22  ;;  %v1152_v14 = vmul.f32 %v353_v46, %v341_v44 }
 0x13b   :  { %v384_v48 = vpop.permute.xlu1 %383 }
 0x13c   :  { %v390_v57 = vsub.f32 %v1067_v54, %v384_v48  ;;  %v391_v58 = vsub.f32 %v1069_v55, %v384_v48 }
 0x140   :  { %v396_v59 = vpop.permute.xlu1 %395 }
 0x141   :  { %v402_v60 = vmul.f32 %v396_v59, %v390_v57  ;;  %v403_v61 = vmul.f32 %v396_v59, %v391_v58 }
 0x143   :  { %v1158_v1 = vmul.f32 %v402_v60, %v390_v57  ;;  %v1160_v6 = vmul.f32 %v403_v61, %v391_v58 }
 0x144   :  { %v400_v8 = vpop.permute.xlu1 %399 }
 0x145   :  { %v404_v26 = vmul.f32 %v400_v8, %v392_v63  ;;  %v405_v9 = vmul.f32 %v400_v8, %v393_v0 }
 0x147   :  { %v1162_v10 = vmul.f32 %v404_v26, %v392_v63  ;;  %v1164_v13 = vmul.f32 %v405_v9, %v393_v0 }
 0x149   :  { %v440_v19 = vpop.permute.xlu1 %439 }
 0x14a   :  { %v444_v28 = vsub.f32 %v1051_v41, %v440_v19  ;;  %v445_v30 = vsub.f32 %v1053_v42, %v440_v19 }
 0x14c   :  { %v456_v33 = vmul.f32 %v452_v20, %v444_v28  ;;  %v457_v34 = vmul.f32 %v452_v20, %v445_v30 }
 0x14e   :  { %v1170_v35 = vmul.f32 %v456_v33, %v444_v28  ;;  %v1172_v39 = vmul.f32 %v457_v34, %v445_v30  ;;  %v448_v22 = vpop.permute.xlu1 %447  ;;  %v922_v33 = vmov 4  }
 0x14f   :  { %v454_v44 = vmul.f32 %v448_v22, %v442_v31  ;;  %v455_v23 = vmul.f32 %v448_v22, %v443_v2 }
 0x151   :  { %v1174_v45 = vmul.f32 %v454_v44, %v442_v31  ;;  %v1176_v46 = vmul.f32 %v455_v23, %v443_v2  ;;  %v918_v31 = vmov 1   ;;  %v919_v2 = vmov 2  }
 0x152   :  { %v923_v23 = vmov 5  }
 0x153   :  { %v1178_v48 = vpop.permute.xlu1 %487 }
 0x157   :  { %v492_v56 = vpop.permute.xlu1 %491 }
 0x158   :  { %v496_v59 = vsub.f32 %v1051_v41, %v492_v56  ;;  %v497_v60 = vsub.f32 %v1053_v42, %v492_v56 }
 0x189   :  { %v80_v57 = vpop.xlane.xlu1 %79 }
 0x18a   :  { %703 = vrcp.f32 %v80_v57  ;;  %v924_v57 = vmov 6  }
 0x18d   :  { %v83_v58 = vpop.xlane.xlu1 %82 }
 0x18e   :  { %705 = vrcp.f32 %v83_v58 }
 0x191   :  { %v504_v61 = vpop.permute.xlu1 %503 }
 0x192   :  { %v508_v63 = vmul.f32 %v504_v61, %v496_v59  ;;  %v509_v0 = vmul.f32 %v504_v61, %v497_v60 }
 0x194   :  { %v704_v7 = vpop.eup %703  ;;  %v1182_v8 = vmul.f32 %v508_v63, %v496_v59  ;;  %v1184_v26 = vmul.f32 %v509_v0, %v497_v60 }
 0x195   :  { %v86_v9 = vmul.f32 %v704_v7, %v1093_v27  ;;  %v1190_v27 = vpop.permute.xlu0 %499 }
 0x197   :  { %v102_v19 = vmul.f32 %v1065_v53, %v86_v9  ;;  %v920_v53 = vmov 3  }
 0x198   :  { %v706_v20 = vpop.eup %705 }
 0x199   :  { %v104_v28 = vmul.f32 0.3989423, %v102_v19  ;;  %v87_v30 = vmul.f32 %v706_v20, %v1097_v29 }
 0x19b   :  { %v103_v41 = vmul.f32 %v1055_v43, %v87_v30  ;;  %158 = vperm.xlu1 %675, %v104_v28   ;;  %v921_v43 = vmov 7  }
 0x19d   :  { %v105_v42 = vmul.f32 0.3989423, %v103_v41 }
 0x19f   :  { %678 = vset.pattern.permute.xlu1 %v918_v31  ;;  %163 = vperm.xlu0 %676, %v105_v42  }
 0x1a0   :  { %215 = vperm.xlu1 %678, %v105_v42  }
 0x1a3   :  { %677 = vset.pattern.permute.xlu0 %v918_v31 }
 0x1a4   :  { %679 = vset.pattern.permute.xlu1 %v919_v2  ;;  %211 = vperm.xlu0 %677, %v104_v28  }
 0x1a5   :  { %263 = vperm.xlu1 %679, %v104_v28  }
 0x1a8   :  { %680 = vset.pattern.permute.xlu0 %v920_v53 }
 0x1a9   :  { %267 = vperm.xlu1 %679, %v105_v42   ;;  %315 = vperm.xlu0 %680, %v104_v28   ;;  %v569_v29 = vpop.xlane.xlu0 %568 }
 0x1aa   :  { %707 = vrcp.f32 %v569_v29 }
 0x1ad   :  { %681 = vset.pattern.permute.xlu1 %v920_v53  ;;  %686 = vset.pattern.permute.xlu0 %v921_v43 }
 0x1ae   :  { %319 = vperm.xlu1 %681, %v105_v42   ;;  %527 = vperm.xlu0 %686, %v105_v42  }
 0x1b2   :  { %682 = vset.pattern.permute.xlu1 %v922_v33 }
 0x1b3   :  { %367 = vperm.xlu1 %682, %v104_v28  }
 0x1b4   :  { %v708_v34 = vpop.eup %707 }
 0x1b5   :  { %v574_v22 = vmul.f32 %v708_v34, %v1104_v37  ;;  %v575_v44 = vmul.f32 %v708_v34, %v1108_v40 }
 0x1b7   :  { %371 = vperm.xlu1 %682, %v105_v42   ;;  %578 = vst [vmem:[#allocation9 + $0x10] sm:$0xff] %v574_v22  ;;  %579 = vst [vmem:[#allocation9 + $0x18] sm:$0xff] %v575_v44 }
 0x1bb   :  { %683 = vset.pattern.permute.xlu1 %v923_v23 }
 0x1bc   :  { %419 = vperm.xlu1 %683, %v104_v28  }
 0x1c0   :  { %423 = vperm.xlu1 %683, %v105_v42  }
 0x1c2   :  { %v566_v56 = vpop.xlane.xlu1 %565 }
 0x1c3   :  { %709 = vrcp.f32 %v566_v56 }
 0x1c4   :  { %684 = vset.pattern.permute.xlu1 %v924_v57 }
 0x1c5   :  { %471 = vperm.xlu1 %684, %v104_v28  }
 0x1c9   :  { %475 = vperm.xlu1 %684, %v105_v42  }
 0x1cd   :  { %v710_v58 = vpop.eup %709  ;;  %685 = vset.pattern.permute.xlu1 %v921_v43 }
 0x1ce   :  { %523 = vperm.xlu1 %685, %v104_v28   ;;  %v572_v37 = vmul.f32 %v710_v58, %v1138_v3  ;;  %v573_v40 = vmul.f32 %v710_v58, %v1140_v32 }
 0x1d0   :  { %576 = vst [vmem:[#allocation9] sm:$0xff] %v572_v37  ;;  %577 = vst [vmem:[#allocation9 + $0x8] sm:$0xff] %v573_v40 }
 0x1d1   :  { %852 = shalt.err (!%p849_p0)
}
 0x1d2   :  { %s853_s6 = scalar_lea.hbm %s1266_s4, 512 }
 0x1d3   :  { %p854_p1 = scmp.ne.s32.totalorder %s1266_s4, %s853_s6  ;;  %p857_p2 = scmp.lt.u32.totalorder %s853_s6, %s1266_s4 }
 0x1d5   :  { %p859_p3 = pnand %p857_p2, %p854_p1 }
 0x1d7   :  { %862 = shalt.err (!%p859_p3)
}
 0x1d8   :  { %603 = dma.vmem_to_hbm [thread:$0]  %s598_s28, 512, %s1266_s4, [#allocation10], %s898_s0, %s898_s0, %s899_s18   ;;  %v152_v3 = vmul.f32 1.442695, %v1061_v51  ;;  %v154_v32 = vmul.f32 1.442695, %v1063_v52 }
 0x1d9   :  { %v148_v59 = vmul.f32 1.442695, %v1077_v4  ;;  %v206_v60 = vmul.f32 1.442695, %v1083_v15  ;;  %v208_v61 = vmul.f32 1.442695, %v1085_v16 }
 0x1da   :  { %711 = vpow2.f32 %v152_v3  ;;  %v150_v63 = vmul.f32 1.442695, %v1079_v5  ;;  %v202_v0 = vmul.f32 1.442695, %v1087_v17  ;;  %v204_v7 = vmul.f32 1.442695, %v1089_v18 }
 0x1db   :  { %713 = vpow2.f32 %v154_v32  ;;  %v254_v51 = vmul.f32 1.442695, %v1115_v49  ;;  %v256_v52 = vmul.f32 1.442695, %v1117_v50  ;;  %v258_v4 = vmul.f32 1.442695, %v1120_v25 }
 0x1dc   :  { %715 = vpow2.f32 %v148_v59  ;;  %v260_v15 = vmul.f32 1.442695, %v1122_v62  ;;  %v306_v5 = vmul.f32 1.442695, %v1132_v21  ;;  %v308_v16 = vmul.f32 1.442695, %v1134_v24 }
 0x1dd   :  { %717 = vpow2.f32 %v206_v60  ;;  %v310_v19 = vmul.f32 1.442695, %v1128_v11  ;;  %v312_v62 = vmul.f32 1.442695, %v1130_v12  ;;  %v358_v11 = vmul.f32 1.442695, %v1142_v36 }
 0x1de   :  { %719 = vpow2.f32 %v208_v61  ;;  %v360_v33 = vmul.f32 1.442695, %v1144_v38  ;;  %v362_v32 = vmul.f32 1.442695, %v1150_v47  ;;  %v364_v38 = vmul.f32 1.442695, %v1152_v14 }
 0x1df   :  { %721 = vpow2.f32 %v150_v63  ;;  %v412_v14 = vmul.f32 1.442695, %v1160_v6  ;;  %v495_v6 = vsub.f32 %v1069_v55, %v1178_v48  ;;  %v466_v55 = vmul.f32 1.442695, %v1170_v35  ;;  %s926_s4 = smov [#allocation8]  }
 0x1e0   :  { %723 = vpow2.f32 %v202_v0  ;;  %s585_s1 = sshll.u32 %s926_s4, 4  ;;  %s586_s1 = int_to_ptr.vmem [resolvable:$true] %s585_s1 }
 0x1e1   :  { %725 = vpow2.f32 %v204_v7  ;;  %s863_s13 = scalar_lea.vmem %s586_s1, 512  ;;  %p868_p5 = scmp.lt.s32.totalorder %s586_s1, %s586_s1 }
 0x1e2   :  { %727 = vpow2.f32 %v254_v51  ;;  %p864_p4 = scmp.ne.s32.totalorder %s586_s1, %s863_s13  ;;  %p869_p6 = scmp.lt.s32.totalorder %s863_s13, %s863_s13 }
 0x1e3   :  { %729 = vpow2.f32 %v256_v52 }
 0x1e4   :  { %v712_v18 = vpop.eup %711  ;;  %731 = vpow2.f32 %v258_v4  ;;  %p870_p7 = por %p869_p6, %p868_p5 }
 0x1e5   :  { %v714_v9 = vpop.eup %713  ;;  %733 = vpow2.f32 %v260_v15 }
 0x1e6   :  { %v716_v49 = vpop.eup %715  ;;  %735 = vpow2.f32 %v306_v5  ;;  %p871_p8 = pnand %p870_p7, %p864_p4 }
 0x1e7   :  { %v718_v50 = vpop.eup %717  ;;  %737 = vpow2.f32 %v308_v16 }
 0x1e8   :  { %v720_v20 = vpop.eup %719  ;;  %739 = vpow2.f32 %v310_v19 }
 0x1e9   :  { %v722_v41 = vpop.eup %721  ;;  %741 = vpow2.f32 %v312_v62  ;;  %v414_v62 = vmul.f32 1.442695, %v1162_v10  ;;  %v462_v10 = vmul.f32 1.442695, %v1174_v45  ;;  %v468_v45 = vmul.f32 1.442695, %v1172_v39 }
 0x1ea   :  { %v724_v31 = vpop.eup %723  ;;  %743 = vpow2.f32 %v358_v11 }
 0x1eb   :  { %v726_v2 = vpop.eup %725  ;;  %745 = vpow2.f32 %v360_v33 }
 0x1ec   :  { %v728_v43 = vpop.eup %727  ;;  %747 = vpow2.f32 %v362_v32 }
 0x1ed   :  { %v730_v22 = vpop.eup %729  ;;  %749 = vpow2.f32 %v364_v38 }
 0x1ee   :  { %v732_v58 = vpop.eup %731 }
 0x1ef   :  { %v734_v3 = vpop.eup %733 }
 0x1f0   :  { %v736_v61 = vpop.eup %735 }
 0x1f1   :  { %v738_v36 = vpop.eup %737 }
 0x21a   :  { %v159_v17 = vpop.permute.xlu1 %158 }
 0x21b   :  { %v166_v12 = vmul.f32 %v716_v49, %v159_v17  ;;  %v167_v44 = vmul.f32 %v722_v41, %v159_v17  ;;  %v410_v49 = vmul.f32 1.442695, %v1158_v1  ;;  %v416_v41 = vmul.f32 1.442695, %v1164_v13 }
 0x21c   :  { %v464_v13 = vmul.f32 1.442695, %v1176_v46  ;;  %v518_v46 = vmul.f32 1.442695, %v1182_v8 }
 0x21d   :  { %751 = vpow2.f32 %v410_v49 }
 0x21e   :  { %v164_v25 = vpop.permute.xlu0 %163  ;;  %753 = vpow2.f32 %v412_v14 }
 0x21f   :  { %v168_v28 = vmul.f32 %v712_v18, %v164_v25  ;;  %v169_v21 = vmul.f32 %v714_v9, %v164_v25  ;;  %v216_v30 = vpop.permute.xlu1 %215  ;;  %v740_v9 = vpop.eup %739  ;;  %755 = vpow2.f32 %v414_v62 }
 0x220   :  { %v220_v24 = vmul.f32 %v718_v50, %v216_v30  ;;  %v221_v42 = vmul.f32 %v720_v20, %v216_v30  ;;  %v742_v50 = vpop.eup %741  ;;  %757 = vpow2.f32 %v416_v41 }
 0x221   :  { %v744_v30 = vpop.eup %743  ;;  %759 = vpow2.f32 %v462_v10 }
 0x222   :  { %v224_v53 = vadd.f32 %v220_v24, %v168_v28  ;;  %v225_v29 = vadd.f32 %v221_v42, %v169_v21  ;;  %v746_v24 = vpop.eup %745  ;;  %v494_v42 = vsub.f32 %v1067_v54, %v1178_v48  ;;  %v507_v54 = vmul.f32 %v1190_v27, %v495_v6 }
 0x223   :  { %v212_v34 = vpop.permute.xlu0 %211  ;;  %761 = vpow2.f32 %v464_v13 }
 0x224   :  { %v218_v23 = vmul.f32 %v724_v31, %v212_v34  ;;  %v219_v56 = vmul.f32 %v726_v2, %v212_v34  ;;  %v264_v57 = vpop.permute.xlu1 %263  ;;  %v506_v33 = vmul.f32 %v1190_v27, %v494_v42  ;;  %763 = vpow2.f32 %v466_v55 }
 0x225   :  { %v270_v37 = vmul.f32 %v728_v43, %v264_v57  ;;  %v271_v40 = vmul.f32 %v730_v22, %v264_v57  ;;  %765 = vpow2.f32 %v468_v45 }
 0x226   :  { %v222_v59 = vadd.f32 %v218_v23, %v166_v12  ;;  %v223_v60 = vadd.f32 %v219_v56, %v167_v44  ;;  %v510_v56 = vmul.f32 %v506_v33, %v494_v42  ;;  %767 = vpow2.f32 %v518_v46 }
 0x228   :  { %v274_v63 = vadd.f32 %v270_v37, %v222_v59  ;;  %v275_v0 = vadd.f32 %v271_v40, %v223_v60  ;;  %v268_v7 = vpop.permute.xlu1 %267  ;;  %v316_v51 = vpop.permute.xlu0 %315  ;;  %v520_v40 = vmul.f32 1.442695, %v1184_v26  ;;  %v514_v35 = vmul.f32 1.442695, %v510_v56 }
 0x229   :  { %v272_v52 = vmul.f32 %v732_v58, %v268_v7  ;;  %v273_v4 = vmul.f32 %v734_v3, %v268_v7  ;;  %v322_v15 = vmul.f32 %v736_v61, %v316_v51  ;;  %v323_v5 = vmul.f32 %v738_v36, %v316_v51 }
 0x22a   :  { %v511_v58 = vmul.f32 %v507_v54, %v495_v6  ;;  %769 = vpow2.f32 %v520_v40 }
 0x22b   :  { %v276_v16 = vadd.f32 %v272_v52, %v224_v53  ;;  %v277_v17 = vadd.f32 %v273_v4, %v225_v29  ;;  %v326_v47 = vadd.f32 %v322_v15, %v274_v63  ;;  %v327_v18 = vadd.f32 %v323_v5, %v275_v0  ;;  %v748_v53 = vpop.eup %747 }
 0x22c   :  { %v750_v11 = vpop.eup %749  ;;  %v516_v36 = vmul.f32 1.442695, %v511_v58  ;;  %771 = vpow2.f32 %v514_v35 }
 0x22d   :  { %v320_v19 = vpop.permute.xlu1 %319  ;;  %v752_v23 = vpop.eup %751 }
 0x22e   :  { %v324_v25 = vmul.f32 %v740_v9, %v320_v19  ;;  %v325_v20 = vmul.f32 %v742_v50, %v320_v19  ;;  %v754_v57 = vpop.eup %753  ;;  %773 = vpow2.f32 %v516_v36 }
 0x22f   :  { %v756_v32 = vpop.eup %755 }
 0x230   :  { %v328_v28 = vadd.f32 %v324_v25, %v276_v16  ;;  %v329_v21 = vadd.f32 %v325_v20, %v277_v17  ;;  %v758_v61 = vpop.eup %757 }
 0x231   :  { %v760_v7 = vpop.eup %759 }
 0x232   :  { %v368_v1 = vpop.permute.xlu1 %367  ;;  %v762_v26 = vpop.eup %761 }
 0x233   :  { %v374_v31 = vmul.f32 %v744_v30, %v368_v1  ;;  %v375_v2 = vmul.f32 %v746_v24, %v368_v1  ;;  %v764_v15 = vpop.eup %763 }
 0x234   :  { %v766_v17 = vpop.eup %765 }
 0x235   :  { %v378_v29 = vadd.f32 %v374_v31, %v326_v47  ;;  %v379_v43 = vadd.f32 %v375_v2, %v327_v18  ;;  %v528_v47 = vpop.permute.xlu0 %527  ;;  %v768_v9 = vpop.eup %767 }
 0x236   :  { %v372_v34 = vpop.permute.xlu1 %371  ;;  %v770_v14 = vpop.eup %769  ;;  %v532_v19 = vmul.f32 %v768_v9, %v528_v47 }
 0x237   :  { %v376_v22 = vmul.f32 %v748_v53, %v372_v34  ;;  %v377_v12 = vmul.f32 %v750_v11, %v372_v34  ;;  %v533_v25 = vmul.f32 %v770_v14, %v528_v47 }
 0x239   :  { %v380_v48 = vadd.f32 %v376_v22, %v328_v28  ;;  %v381_v44 = vadd.f32 %v377_v12, %v329_v21  ;;  %v772_v28 = vpop.eup %771 }
 0x23a   :  { %v774_v21 = vpop.eup %773 }
 0x23b   :  { %v420_v37 = vpop.permute.xlu1 %419 }
 0x23c   :  { %v426_v27 = vmul.f32 %v752_v23, %v420_v37  ;;  %v427_v3 = vmul.f32 %v754_v57, %v420_v37 }
 0x23e   :  { %v430_v59 = vadd.f32 %v426_v27, %v378_v29  ;;  %v431_v60 = vadd.f32 %v427_v3, %v379_v43 }
 0x23f   :  { %v424_v39 = vpop.permute.xlu1 %423 }
 0x240   :  { %v428_v38 = vmul.f32 %v756_v32, %v424_v39  ;;  %v429_v63 = vmul.f32 %v758_v61, %v424_v39 }
 0x242   :  { %v432_v8 = vadd.f32 %v428_v38, %v380_v48  ;;  %v433_v0 = vadd.f32 %v429_v63, %v381_v44 }
 0x244   :  { %v472_v51 = vpop.permute.xlu1 %471 }
 0x245   :  { %v478_v52 = vmul.f32 %v760_v7, %v472_v51  ;;  %v479_v4 = vmul.f32 %v762_v26, %v472_v51 }
 0x247   :  { %v482_v5 = vadd.f32 %v478_v52, %v430_v59  ;;  %v483_v16 = vadd.f32 %v479_v4, %v431_v60 }
 0x248   :  { %v476_v18 = vpop.permute.xlu1 %475 }
 0x249   :  { %v480_v49 = vmul.f32 %v764_v15, %v476_v18  ;;  %v481_v50 = vmul.f32 %v766_v17, %v476_v18 }
 0x24b   :  { %v484_v20 = vadd.f32 %v480_v49, %v432_v8  ;;  %v485_v62 = vadd.f32 %v481_v50, %v433_v0 }
 0x24d   :  { %v536_v30 = vadd.f32 %v532_v19, %v484_v20  ;;  %v537_v41 = vadd.f32 %v533_v25, %v485_v62  ;;  %v524_v24 = vpop.permute.xlu1 %523 }
 0x24e   :  { %v530_v42 = vmul.f32 %v772_v28, %v524_v24  ;;  %v531_v1 = vmul.f32 %v774_v21, %v524_v24 }
 0x24f   :  { %540 = vst [vmem:[#allocation8 + $0x10] sm:$0xff] %v536_v30  ;;  %541 = vst [vmem:[#allocation8 + $0x18] sm:$0xff] %v537_v41 }
 0x250   :  { %v534_v6 = vadd.f32 %v530_v42, %v482_v5  ;;  %v535_v31 = vadd.f32 %v531_v1, %v483_v16 }
 0x252   :  { %538 = vst [vmem:[#allocation8] sm:$0xff] %v534_v6  ;;  %539 = vst [vmem:[#allocation8 + $0x8] sm:$0xff] %v535_v31 }
 0x253   :  { %874 = shalt.err (!%p871_p8)
}
 0x254   :  { %s875_s16 = scalar_lea.hbm %s1265_s3, 512 }
 0x255   :  { %p876_p9 = scmp.ne.s32.totalorder %s1265_s3, %s875_s16  ;;  %p879_p10 = scmp.lt.u32.totalorder %s875_s16, %s1265_s3 }
 0x257   :  { %p881_p11 = pnand %p879_p10, %p876_p9 }
 0x259   :  { %884 = shalt.err (!%p881_p11)
}
 0x25a   :  { %591 = dma.vmem_to_hbm [thread:$0]  %s586_s1, 512, %s1265_s3, [#allocation4], %s898_s0, %s898_s0, %s899_s18  }
 0x25b   :  { %889 = dma.done.wait [#allocation4], 512  }
 0x25c   :  { %890 = vsyncadd [#allocation4], 4294966784 }
 0x25d   :  { %891 = dma.done.wait [#allocation10], 512  }
 0x25e   :  { %892 = vsyncadd [#allocation10], 4294966784 }
 0x25f   :  { %610 = vsyncpa [#allocation3], 1 }
 0x260   :  { %611 = vsyncpa [#allocation6], 1 }
 0x261   :  { %612 = vsyncpa [#allocation4], 1 }
 0x262   :  { %613 = vsyncpa [#allocation10], 1 }

</bundles_post_ra>
